<compile_context>
chip_gen: v7x
topology: tpu7x:2x2x1
jax: 0.10.0
libtpu: 0.0.40
codegen_flags: <defaults>
</compile_context>

<pallas_src>
import jax
import jax.numpy as jnp
from jax.experimental import pallas as pl
from jax.experimental.pallas import tpu as pltpu

EPS = 1e-6          # torch F.pairwise_distance default eps
MARGIN = 1.0        # TripletLoss(margin=1.0)

_INPUT_VMEM_BUDGET = 24 * 1024 * 1024   # 3 inputs x 2 pipeline buffers must fit here
_VMEM_LIMIT_BYTES = 32 * 1024 * 1024    # explicit scoped-VMEM limit (ok on v5e/v6e/v7x)
_MAX_TILE_ROWS = 1024


def _choose_tile_rows(batch, dim, itemsize, block_rows=None):
    """Pick a batch-row tile so 3 inputs x 2 buffers fit the VMEM budget."""
    if block_rows is None:
        per_row = 3 * 2 * dim * itemsize
        t = _INPUT_VMEM_BUDGET // max(per_row, 1)
        t = min(t, _MAX_TILE_ROWS)
    else:
        t = block_rows
    t = max(8, (t // 8) * 8)             # sublane multiple (layout-legal block)
    if t >= batch:
        return int(batch)                # single block == full array dims (always legal)
    return int(t)


def _make_kernel(batch, tile, margin, need_mask):
    """Per-block kernel: emits partial sums for this batch tile."""

    def kernel(a_ref, p_ref, n_ref, part_ref):
        a = a_ref[...].astype(jnp.float32)
        p = p_ref[...].astype(jnp.float32)
        n = n_ref[...].astype(jnp.float32)

        dp = a - p + EPS
        dn = a - n + EPS

        # NOTE: for small D (< 128 lanes) the VPU/XLU run partially masked;
        # irrelevant here since the kernel is HBM-bandwidth bound.
        pos_d = jnp.sqrt(jnp.sum(dp * dp, axis=-1, keepdims=True))   # (tile, 1)
        neg_d = jnp.sqrt(jnp.sum(dn * dn, axis=-1, keepdims=True))   # (tile, 1)
        hinge = jnp.maximum(pos_d - neg_d + margin, 0.0)

        if need_mask:
            # Ragged last block: rows >= batch hold unspecified data (no
            # wrapper-side padding copy). Select-out with where so any
            # garbage-driven NaN/Inf cannot leak into the sums.
            row = (pl.program_id(0) * tile
                   + jax.lax.broadcasted_iota(jnp.int32, (tile, 1), 0))
            valid = row < batch
            pos_d = jnp.where(valid, pos_d, 0.0)
            neg_d = jnp.where(valid, neg_d, 0.0)
            hinge = jnp.where(valid, hinge, 0.0)

        s_h = jnp.sum(hinge)
        s_p = jnp.sum(pos_d)
        s_n = jnp.sum(neg_d)

        # Lane-dense (8, 128) partial slab: sublane 0, lanes 0..2 hold the sums.
        lane = jax.lax.broadcasted_iota(jnp.int32, (8, 128), 1)
        sub = jax.lax.broadcasted_iota(jnp.int32, (8, 128), 0)
        row0 = jnp.where(lane == 0, s_h,
               jnp.where(lane == 1, s_p,
               jnp.where(lane == 2, s_n, 0.0)))
        part_ref[0] = jnp.where(sub == 0, row0, 0.0)

    return kernel


def triplet_loss(anchor, positive, negative, *, margin=MARGIN, block_rows=None):
    """Returns (loss, {'pos_dist': ..., 'neg_dist': ...}) like the nn.Module."""
    assert anchor.shape == positive.shape == negative.shape
    assert anchor.ndim >= 2
    D = anchor.shape[-1]
    anchor = anchor.reshape(-1, D)
    positive = positive.reshape(-1, D)
    negative = negative.reshape(-1, D)
    B = anchor.shape[0]
    itemsize = jnp.dtype(anchor.dtype).itemsize

    tile = _choose_tile_rows(B, D, itemsize, block_rows)
    nb = pl.cdiv(B, tile)
    need_mask = (B % tile) != 0

    in_spec = pl.BlockSpec((tile, D), lambda i: (i, 0))
    out_spec = pl.BlockSpec((1, 8, 128), lambda i: (i, 0, 0))

    kernel = _make_kernel(B, tile, float(margin), need_mask)

    cost = pl.CostEstimate(
        flops=10 * B * D,                 # diffs, squares, adds for 2 streams + hinge
        transcendentals=2 * B,            # two sqrt per row
        bytes_accessed=3 * B * D * itemsize + nb * 8 * 128 * 4,
    )

    partials = pl.pallas_call(
        kernel,
        out_shape=jax.ShapeDtypeStruct((nb, 8, 128), jnp.float32),
        grid_spec=pltpu.PrefetchScalarGridSpec(
            num_scalar_prefetch=0,
            grid=(nb,),
            in_specs=[in_spec, in_spec, in_spec],
            out_specs=out_spec,
        ),
        compiler_params=pltpu.CompilerParams(
            dimension_semantics=("parallel",),
            vmem_limit_bytes=_VMEM_LIMIT_BYTES,
        ),
        cost_estimate=cost,
    )(anchor, positive, negative)

    inv_b = 1.0 / B
    sums = jnp.sum(partials[:, 0, :3], axis=0)      # [sum(hinge), sum(pos_d), sum(neg_d)]
    loss = sums[0] * inv_b
    stats = {"pos_dist": sums[1] * inv_b, "neg_dist": sums[2] * inv_b}
    return loss, stats


def _ref_triplet_loss(anchor, positive, negative, margin=MARGIN):
    # Pure-JAX reference mirroring torch semantics.
    a = anchor.astype(jnp.float32)
    p = positive.astype(jnp.float32)
    n = negative.astype(jnp.float32)
    pos_d = jnp.sqrt(jnp.sum((a - p + EPS) ** 2, axis=-1))
    neg_d = jnp.sqrt(jnp.sum((a - n + EPS) ** 2, axis=-1))
    loss = jnp.mean(jnp.maximum(pos_d - neg_d + margin, 0.0))
    return loss, pos_d.mean(), neg_d.mean()


if __name__ == "__main__":
    key = jax.random.PRNGKey(0)
    k1, k2, k3, k4, k5, k6 = jax.random.split(key, 6)

    # Case 1: small embedding batch, consistent with the module's inputs.
    B, D = 8, 32
    anchor = jax.random.normal(k1, (B, D), dtype=jnp.float32)
    positive = jax.random.normal(k2, (B, D), dtype=jnp.float32)
    negative = jax.random.normal(k3, (B, D), dtype=jnp.float32)

    loss, stats = triplet_loss(anchor, positive, negative)
    jax.block_until_ready(loss)
    jax.block_until_ready(stats["pos_dist"])
    jax.block_until_ready(stats["neg_dist"])

    ref_loss, ref_pos, ref_neg = _ref_triplet_loss(anchor, positive, negative)
    assert jnp.allclose(loss, ref_loss, atol=1e-5, rtol=1e-5)
    assert jnp.allclose(stats["pos_dist"], ref_pos, atol=1e-5, rtol=1e-5)
    assert jnp.allclose(stats["neg_dist"], ref_neg, atol=1e-5, rtol=1e-5)

    # Case 2: ragged batch + small tile to exercise the multi-block grid,
    # the in-kernel ragged-row mask (no wrapper padding) and the "parallel"
    # partial-sum reduction path.
    B2, D2 = 205, 96
    a2 = jax.random.normal(k4, (B2, D2), dtype=jnp.float32)
    p2 = jax.random.normal(k5, (B2, D2), dtype=jnp.float32)
    n2 = jax.random.normal(k6, (B2, D2), dtype=jnp.float32)

    loss2, stats2 = triplet_loss(a2, p2, n2, block_rows=64)
    jax.block_until_ready(loss2)

    ref_loss2, ref_pos2, ref_neg2 = _ref_triplet_loss(a2, p2, n2)
    assert jnp.allclose(loss2, ref_loss2, atol=1e-5, rtol=1e-5)
    assert jnp.allclose(stats2["pos_dist"], ref_pos2, atol=1e-5, rtol=1e-5)
    assert jnp.allclose(stats2["neg_dist"], ref_neg2, atol=1e-5, rtol=1e-5)

    print("KERNEL_OK")
</pallas_src>

<mosaic_0001>
module attributes {stable_mosaic.version = 11 : i64} {
  func.func @kernel(%arg0: i32, %arg1: memref<8x32xf32, #tpu.memory_space<vmem>>, %arg2: memref<8x32xf32, #tpu.memory_space<vmem>>, %arg3: memref<8x32xf32, #tpu.memory_space<vmem>>, %arg4: memref<1x8x128xf32, #tpu.memory_space<vmem>>) attributes {dimension_semantics = [#tpu.dimension_semantics<parallel>], iteration_bounds = array<i64: 1>, scalar_prefetch = 0 : i64, scratch_operands = 0 : i64, tpu.core_type = #tpu.core_type<tc>, window_params = [{transform_indices = @transform_0, window_bounds = array<i64: 8, 32>}, {transform_indices = @transform_1, window_bounds = array<i64: 8, 32>}, {transform_indices = @transform_2, window_bounds = array<i64: 8, 32>}, {transform_indices = @transform_3, window_bounds = array<i64: 1, 8, 128>}]} {
    %c0 = arith.constant 0 : index
    %c0_0 = arith.constant 0 : index
    %0 = vector.load %arg1[%c0, %c0_0] : memref<8x32xf32, #tpu.memory_space<vmem>>, vector<8x32xf32>
    %c0_1 = arith.constant 0 : index
    %c0_2 = arith.constant 0 : index
    %1 = vector.load %arg2[%c0_1, %c0_2] : memref<8x32xf32, #tpu.memory_space<vmem>>, vector<8x32xf32>
    %c0_3 = arith.constant 0 : index
    %c0_4 = arith.constant 0 : index
    %2 = vector.load %arg3[%c0_3, %c0_4] : memref<8x32xf32, #tpu.memory_space<vmem>>, vector<8x32xf32>
    %3 = arith.subf %0, %1 : vector<8x32xf32>
    %cst = arith.constant 9.99999997E-7 : f32
    %4 = vector.broadcast %cst : f32 to vector<8x32xf32>
    %5 = arith.addf %3, %4 : vector<8x32xf32>
    %6 = arith.subf %0, %2 : vector<8x32xf32>
    %cst_5 = arith.constant 9.99999997E-7 : f32
    %7 = vector.broadcast %cst_5 : f32 to vector<8x32xf32>
    %8 = arith.addf %6, %7 : vector<8x32xf32>
    %9 = arith.mulf %5, %5 : vector<8x32xf32>
    %cst_6 = arith.constant dense<0.000000e+00> : vector<8xf32>
    %10 = vector.multi_reduction <add>, %9, %cst_6 [1] : vector<8x32xf32> to vector<8xf32>
    %11 = vector.shape_cast %10 : vector<8xf32> to vector<8x1xf32>
    %12 = math.sqrt %11 : vector<8x1xf32>
    %13 = arith.mulf %8, %8 : vector<8x32xf32>
    %cst_7 = arith.constant dense<0.000000e+00> : vector<8xf32>
    %14 = vector.multi_reduction <add>, %13, %cst_7 [1] : vector<8x32xf32> to vector<8xf32>
    %15 = vector.shape_cast %14 : vector<8xf32> to vector<8x1xf32>
    %16 = math.sqrt %15 : vector<8x1xf32>
    %17 = arith.subf %12, %16 : vector<8x1xf32>
    %cst_8 = arith.constant 1.000000e+00 : f32
    %18 = vector.broadcast %cst_8 : f32 to vector<8x1xf32>
    %19 = arith.addf %17, %18 : vector<8x1xf32>
    %cst_9 = arith.constant 0.000000e+00 : f32
    %20 = vector.broadcast %cst_9 : f32 to vector<8x1xf32>
    %21 = arith.maximumf %19, %20 : vector<8x1xf32>
    %22 = vector.shape_cast %21 : vector<8x1xf32> to vector<1x8x1xf32>
    %cst_10 = arith.constant dense<0.000000e+00> : vector<1xf32>
    %23 = vector.multi_reduction <add>, %22, %cst_10 [1, 2] : vector<1x8x1xf32> to vector<1xf32>
    %24 = vector.shape_cast %23 : vector<1xf32> to vector<1x1x1xf32>
    %25 = vector.extract %24[0, 0, 0] : f32 from vector<1x1x1xf32>
    %26 = vector.shape_cast %12 : vector<8x1xf32> to vector<1x8x1xf32>
    %cst_11 = arith.constant dense<0.000000e+00> : vector<1xf32>
    %27 = vector.multi_reduction <add>, %26, %cst_11 [1, 2] : vector<1x8x1xf32> to vector<1xf32>
    %28 = vector.shape_cast %27 : vector<1xf32> to vector<1x1x1xf32>
    %29 = vector.extract %28[0, 0, 0] : f32 from vector<1x1x1xf32>
    %30 = vector.shape_cast %16 : vector<8x1xf32> to vector<1x8x1xf32>
    %cst_12 = arith.constant dense<0.000000e+00> : vector<1xf32>
    %31 = vector.multi_reduction <add>, %30, %cst_12 [1, 2] : vector<1x8x1xf32> to vector<1xf32>
    %32 = vector.shape_cast %31 : vector<1xf32> to vector<1x1x1xf32>
    %33 = vector.extract %32[0, 0, 0] : f32 from vector<1x1x1xf32>
    %34 = tpu.iota {dimensions = array<i32: 1>} : vector<8x128xi32>
    %35 = tpu.iota {dimensions = array<i32: 0>} : vector<8x128xi32>
    %c0_i32 = arith.constant 0 : i32
    %36 = vector.broadcast %c0_i32 : i32 to vector<8x128xi32>
    %37 = arith.cmpi eq, %34, %36 : vector<8x128xi32>
    %c1_i32 = arith.constant 1 : i32
    %38 = vector.broadcast %c1_i32 : i32 to vector<8x128xi32>
    %39 = arith.cmpi eq, %34, %38 : vector<8x128xi32>
    %c2_i32 = arith.constant 2 : i32
    %40 = vector.broadcast %c2_i32 : i32 to vector<8x128xi32>
    %41 = arith.cmpi eq, %34, %40 : vector<8x128xi32>
    %cst_13 = arith.constant 0.000000e+00 : f32
    %42 = vector.broadcast %33 : f32 to vector<8x128xf32>
    %43 = vector.broadcast %cst_13 : f32 to vector<8x128xf32>
    %44 = arith.select %41, %42, %43 : vector<8x128xi1>, vector<8x128xf32>
    %45 = vector.broadcast %29 : f32 to vector<8x128xf32>
    %46 = arith.select %39, %45, %44 : vector<8x128xi1>, vector<8x128xf32>
    %47 = vector.broadcast %25 : f32 to vector<8x128xf32>
    %48 = arith.select %37, %47, %46 : vector<8x128xi1>, vector<8x128xf32>
    %c0_i32_14 = arith.constant 0 : i32
    %49 = vector.broadcast %c0_i32_14 : i32 to vector<8x128xi32>
    %50 = arith.cmpi eq, %35, %49 : vector<8x128xi32>
    %cst_15 = arith.constant 0.000000e+00 : f32
    %51 = vector.broadcast %cst_15 : f32 to vector<8x128xf32>
    %52 = arith.select %50, %48, %51 : vector<8x128xi1>, vector<8x128xf32>
    %c0_16 = arith.constant 0 : index
    %c0_17 = arith.constant 0 : index
    %c0_18 = arith.constant 0 : index
    %53 = vector.load %arg4[%c0_16, %c0_17, %c0_18] : memref<1x8x128xf32, #tpu.memory_space<vmem>>, vector<1x8x128xf32>
    %54 = vector.shape_cast %53 : vector<1x8x128xf32> to vector<8x128xf32>
    %55 = vector.shape_cast %52 : vector<8x128xf32> to vector<1x8x128xf32>
    tpu.vector_store %arg4[%c0_16, %c0_17, %c0_18], %55 {strides = array<i32>} : memref<1x8x128xf32, #tpu.memory_space<vmem>>, vector<1x8x128xf32>,
    return
  }
  func.func @transform_0(%arg0: i32) -> (i32, i32) {
    %c0_i32 = arith.constant 0 : i32
    %c0_i32_0 = arith.constant 0 : i32
    return %arg0, %c0_i32 : i32, i32
  }
  func.func @transform_1(%arg0: i32) -> (i32, i32) {
    %c0_i32 = arith.constant 0 : i32
    %c0_i32_0 = arith.constant 0 : i32
    return %arg0, %c0_i32 : i32, i32
  }
  func.func @transform_2(%arg0: i32) -> (i32, i32) {
    %c0_i32 = arith.constant 0 : i32
    %c0_i32_0 = arith.constant 0 : i32
    return %arg0, %c0_i32 : i32, i32
  }
  func.func @transform_3(%arg0: i32) -> (i32, i32, i32) {
    %c0_i32 = arith.constant 0 : i32
    %c0_i32_0 = arith.constant 0 : i32
    %c0_i32_1 = arith.constant 0 : i32
    return %arg0, %c0_i32, %c0_i32_0 : i32, i32, i32
  }
}

</mosaic_0001>

<bundles_post_ra>
// kernel: tpu_custom_call.1
= control target key start
LH: loop header
LB: loop body
LE: loop exit
PB: predicated region body
PF: predicated region fallthrough
CT: control target
= control target key end

     0   :  { %8 = vsyncpa [#allocation3], 0  ;;  %s326_s0 = inlined_call_operand.hbm [shape: f32[8,32], index: 0, kind: input, shape index: {}]   ;;  %s327_s1 = inlined_call_operand.hbm [shape: f32[8,32], index: 1, kind: input, shape index: {}]   ;;  %s328_s2 = inlined_call_operand.hbm [shape: f32[8,32], index: 2, kind: input, shape index: {}]   ;;  %s329_s3 = inlined_call_operand.hbm [shape: f32[1,8,128], index: 3, kind: output, shape index: {}]  }
   0x1   :  { %9 = vsyncpa [#allocation6], 0 }
   0x2   :  { %10 = vsyncpa [#allocation4], 0  ;;  %s254_s12 = smov [#allocation5]   ;;  %s255_s14 = smov [#allocation2]  }
   0x3   :  { %s27_s13 = sshll.u32 %s254_s12, 4  ;;  %s17_s15 = sshll.u32 %s255_s14, 4  ;;  %s28_s13 = int_to_ptr.vmem [resolvable:$true] %s27_s13  ;;  %s18_s15 = int_to_ptr.vmem [resolvable:$true] %s17_s15 }
   0x4   :  { %s160_s18 = scalar_lea.hbm %s327_s1, 128 }
   0x5   :  { %p161_p0 = scmp.ne.s32.totalorder %s327_s1, %s160_s18  ;;  %p164_p1 = scmp.lt.u32.totalorder %s160_s18, %s327_s1 }
   0x7   :  { %p166_p2 = pnand %p164_p1, %p161_p0 }
   0x9   :  { %169 = shalt.err (!%p166_p2)
}
   0xa   :  { %s170_s23 = scalar_lea.vmem %s28_s13, 128  ;;  %p175_p4 = scmp.lt.s32.totalorder %s28_s13, %s28_s13 }
   0xb   :  { %p171_p3 = scmp.ne.s32.totalorder %s28_s13, %s170_s23  ;;  %p176_p5 = scmp.lt.s32.totalorder %s170_s23, %s170_s23 }
   0xd   :  { %p177_p6 = por %p176_p5, %p175_p4 }
   0xf   :  { %p178_p7 = pnand %p177_p6, %p171_p3 }
  0x11   :  { %181 = shalt.err (!%p178_p7)
}
  0x12   :  { %30 = dma.hbm_to_vmem [thread:$0]  %s327_s1, 128, %s28_s13, [#allocation6]  }
  0x13   :  { %s182_s28 = scalar_lea.hbm %s326_s0, 128 }
  0x14   :  { %p183_p8 = scmp.ne.s32.totalorder %s326_s0, %s182_s28  ;;  %p186_p9 = scmp.lt.u32.totalorder %s182_s28, %s326_s0 }
  0x16   :  { %p188_p10 = pnand %p186_p9, %p183_p8 }
  0x18   :  { %191 = shalt.err (!%p188_p10)
}
  0x19   :  { %s192_s6 = scalar_lea.vmem %s18_s15, 128  ;;  %p197_p12 = scmp.lt.s32.totalorder %s18_s15, %s18_s15 }
  0x1a   :  { %p193_p11 = scmp.ne.s32.totalorder %s18_s15, %s192_s6  ;;  %p198_p13 = scmp.lt.s32.totalorder %s192_s6, %s192_s6 }
  0x1c   :  { %p199_p0 = por %p198_p13, %p197_p12 }
  0x1e   :  { %p200_p1 = pnand %p199_p0, %p193_p11 }
  0x20   :  { %203 = shalt.err (!%p200_p1)
}
  0x21   :  { %20 = dma.hbm_to_vmem [thread:$0]  %s326_s0, 128, %s18_s15, [#allocation3]  }
  0x22   :  { %s256_s8 = smov [#allocation7]   ;;  %s204_s12 = scalar_lea.hbm %s328_s2, 128 }
  0x23   :  { %s37_s9 = sshll.u32 %s256_s8, 4  ;;  %p205_p2 = scmp.ne.s32.totalorder %s328_s2, %s204_s12  ;;  %s38_s9 = int_to_ptr.vmem [resolvable:$true] %s37_s9 }
  0x24   :  { %p208_p3 = scmp.lt.u32.totalorder %s204_s12, %s328_s2 }
  0x26   :  { %p210_p4 = pnand %p208_p3, %p205_p2 }
  0x28   :  { %213 = shalt.err (!%p210_p4)
}
  0x29   :  { %s214_s18 = scalar_lea.vmem %s38_s9, 128  ;;  %p219_p6 = scmp.lt.s32.totalorder %s38_s9, %s38_s9 }
  0x2a   :  { %p215_p5 = scmp.ne.s32.totalorder %s38_s9, %s214_s18  ;;  %p220_p7 = scmp.lt.s32.totalorder %s214_s18, %s214_s18 }
  0x2c   :  { %p221_p8 = por %p220_p7, %p219_p6 }
  0x2e   :  { %p222_p9 = pnand %p221_p8, %p215_p5 }
  0x30   :  { %225 = shalt.err (!%p222_p9)
}
  0x31   :  { %40 = dma.hbm_to_vmem [thread:$0]  %s328_s2, 128, %s38_s9, [#allocation6]  }
  0x32   :  { %248 = dma.done.wait [#allocation3], 128  }
  0x33   :  { %249 = vsyncadd [#allocation3], 4294967168 }
  0x34   :  { %250 = dma.done.wait [#allocation6], 256  }
  0x35   :  { %251 = vsyncadd [#allocation6], 4294967040  ;;  %v50_v0 = vld [vmem:[#allocation2] sm:$0xff]  ;;  %v51_v1 = vld [vmem:[#allocation5] sm:$0xff]  ;;  %vm58_vm0 = vcmask 261120   ;;  %vm83_vm5 = vcmask 7168   ;;  %v114_v50 = vlaneseq }
  0x36   :  { %v52_v2 = vld [vmem:[#allocation7] sm:$0xff]  ;;  %v53_v3 = vsub.f32 %v50_v0, %v51_v1  ;;  %s257_s21 = smov [#allocation8]  }
  0x37   :  { %v55_v4 = vsub.f32 %v50_v0, %v52_v2  ;;  %v115_v51 = vand.u32 127, %v114_v50  ;;  %v117_v52 = vshrl.u32 %v114_v50, 7  ;;  %s136_s22 = sshll.u32 %s257_s21, 4  ;;  %s137_s22 = int_to_ptr.vmem [resolvable:$true] %s136_s22 }
  0x38   :  { %v54_v5 = vadd.f32 1e-06, %v53_v3  ;;  %s226_s23 = scalar_lea.vmem %s137_s22, 128  ;;  %p231_p11 = scmp.lt.s32.totalorder %s137_s22, %s137_s22 }
  0x39   :  { %v56_v6 = vadd.f32 1e-06, %v55_v4  ;;  %vm120_vm6 = vcmp.eq.s32.totalorder %v115_v51, 2  ;;  %vm119_vm7 = vcmp.eq.s32.totalorder %v115_v51, 1  ;;  %vm118_vm8 = vcmp.eq.s32.totalorder %v115_v51, 0  ;;  %p227_p10 = scmp.ne.s32.totalorder %s137_s22, %s226_s23  ;;  %p232_p12 = scmp.lt.s32.totalorder %s226_s23, %s226_s23 }
  0x3a   :  { %v57_v7 = vmul.f32 %v54_v5, %v54_v5  ;;  %vm127_vm9 = vcmp.eq.s32.totalorder %v117_v52, 0 }
  0x3b   :  { %v69_v8 = vmul.f32 %v56_v6, %v56_v6  ;;  %p233_p13 = por %p232_p12, %p231_p11 }
  0x3c   :  { %v59_v9 = vsel %vm58_vm0, %v57_v7, 0.0 }
  0x3d   :  { %60 = vadd.xlane.f32.xlu0 %v59_v9  ;;  %v70_v10 = vsel %vm58_vm0, %v69_v8, 0.0  ;;  %p234_p0 = pnand %p233_p13, %p227_p10 }
  0x41   :  { %71 = vadd.xlane.f32.xlu0 %v70_v10 }
  0xca   :  { %v61_v11 = vpop.xlane.xlu0 %60 }
  0xcb   :  { %156 = vrsqrt.f32 %v61_v11  ;;  %vm64_vm1 = vcmp.eq.f32.partialorder %v61_v11, inf  ;;  %v67_v18 = vand.u32 2147483648, %v61_v11  ;;  %vm66_vm3 = vcmp.eq.f32.partialorder %v61_v11, 0.0 }
  0xce   :  { %v72_v12 = vpop.xlane.xlu0 %71 }
  0xcf   :  { %158 = vrsqrt.f32 %v72_v12  ;;  %vm75_vm2 = vcmp.eq.f32.partialorder %v72_v12, inf  ;;  %v78_v19 = vand.u32 2147483648, %v72_v12  ;;  %vm77_vm4 = vcmp.eq.f32.partialorder %v72_v12, 0.0 }
  0xd5   :  { %v157_v13 = vpop.eup %156 }
  0xd6   :  { %v63_v14 = vmul.f32 %v157_v13, %v61_v11 }
  0xd8   :  { %v65_v16 = vsel %vm64_vm1, %v61_v11, %v63_v14 }
  0xd9   :  { %v159_v15 = vpop.eup %158  ;;  %v68_v21 = vsel %vm66_vm3, %v67_v18, %v65_v16 }
  0xda   :  { %v74_v17 = vmul.f32 %v159_v15, %v72_v12  ;;  %v94_v28 = vsel %vm83_vm5, %v68_v21, 0.0 }
  0xdc   :  { %v76_v20 = vsel %vm75_vm2, %v72_v12, %v74_v17 }
  0xdd   :  { %v79_v22 = vsel %vm77_vm4, %v78_v19, %v76_v20 }
  0xde   :  { %v104_v23 = vsel %vm83_vm5, %v79_v22, 0.0  ;;  %v80_v24 = vsub.f32 %v68_v21, %v79_v22 }
  0xdf   :  { %105 = vadd.xlane.f32.xlu0 %v104_v23 }
  0xe0   :  { %v81_v25 = vadd.f32 1.0, %v80_v24 }
  0xe2   :  { %v82_v26 = vmax.f32 %v81_v25, 0.0 }
  0xe4   :  { %v84_v27 = vsel %vm83_vm5, %v82_v26, 0.0 }
  0xe5   :  { %85 = vadd.xlane.f32.xlu1 %v84_v27 }
  0xe9   :  { %95 = vadd.xlane.f32.xlu1 %v94_v28 }
 0x16c   :  { %v106_v29 = vpop.xlane.xlu0 %105 }
 0x16d   :  { %v107_v30 = vrot.slane %v106_v29, 4 }
 0x16f   :  { %v108_v31 = vadd.f32 %v107_v30, %v106_v29 }
 0x171   :  { %v109_v35 = vrot.slane %v108_v31, 2 }
 0x172   :  { %v86_v32 = vpop.xlane.xlu1 %85 }
 0x173   :  { %v87_v33 = vrot.slane %v86_v32, 4  ;;  %v110_v41 = vadd.f32 %v109_v35, %v108_v31 }
 0x175   :  { %v88_v34 = vadd.f32 %v87_v33, %v86_v32  ;;  %v111_v46 = vrot.slane %v110_v41, 1 }
 0x176   :  { %v96_v36 = vpop.xlane.xlu1 %95 }
 0x177   :  { %v89_v37 = vrot.slane %v88_v34, 2  ;;  %v97_v38 = vrot.slane %v96_v36, 4  ;;  %v112_v49 = vadd.f32 %v111_v46, %v110_v41 }
 0x179   :  { %v98_v39 = vadd.f32 %v97_v38, %v96_v36  ;;  %v90_v40 = vadd.f32 %v89_v37, %v88_v34 }
 0x17b   :  { %v99_v42 = vrot.slane %v98_v39, 2  ;;  %v91_v43 = vrot.slane %v90_v40, 1 }
 0x17d   :  { %v100_v44 = vadd.f32 %v99_v42, %v98_v39  ;;  %v92_v45 = vadd.f32 %v91_v43, %v90_v40 }
 0x17f   :  { %146 = vpush %v92_v45  ;;  %v101_v47 = vrot.slane %v100_v44, 1 }
 0x181   :  { %v102_v48 = vadd.f32 %v101_v47, %v100_v44 }
 0x183   :  { %148 = vpush %v102_v48 }
 0x184   :  { %150 = vpush %v112_v49 }
 0x1b0   :  { %s147_s2 = spop %146 }
 0x1b1   :  { %v125_v56 = vstv %s147_s2 }
 0x1b4   :  { %s149_s19 = spop %148 }
 0x1b5   :  { %v123_v53 = vstv %s149_s19  ;;  %s151_s20 = spop %150 }
 0x1b6   :  { %v121_v54 = vstv %s151_s20 }
 0x1b7   :  { %v122_v55 = vsel %vm120_vm6, %v121_v54, 0.0 }
 0x1b8   :  { %v124_v57 = vsel %vm119_vm7, %v123_v53, %v122_v55 }
 0x1b9   :  { %v126_v58 = vsel %vm118_vm8, %v125_v56, %v124_v57 }
 0x1ba   :  { %v128_v59 = vsel %vm127_vm9, %v126_v58, 0.0 }
 0x1bb   :  { %129 = vst [vmem:[#allocation8] sm:$0xff] %v128_v59 }
 0x1bc   :  { %237 = shalt.err (!%p234_p0)
}
 0x1bd   :  { %s238_s26 = scalar_lea.hbm %s329_s3, 128 }
 0x1be   :  { %p239_p1 = scmp.ne.s32.totalorder %s329_s3, %s238_s26  ;;  %p242_p2 = scmp.lt.u32.totalorder %s238_s26, %s329_s3 }
 0x1c0   :  { %p244_p3 = pnand %p242_p2, %p239_p1 }
 0x1c2   :  { %247 = shalt.err (!%p244_p3)
}
 0x1c3   :  { %139 = dma.vmem_to_hbm [thread:$0]  %s137_s22, 128, %s329_s3, [#allocation4]  }
 0x1c4   :  { %252 = dma.done.wait [#allocation4], 128  }
 0x1c5   :  { %253 = vsyncadd [#allocation4], 4294967168 }
 0x1c6   :  { %143 = vsyncpa [#allocation3], 1 }
 0x1c7   :  { %144 = vsyncpa [#allocation6], 1 }
 0x1c8   :  { %145 = vsyncpa [#allocation4], 1 }

</bundles_post_ra>
